<compile_context>
chip_gen: v7x
topology: tpu7x:2x2x1
jax: 0.10.0
libtpu: 0.0.40
codegen_flags: <defaults>
</compile_context>

<pallas_src>
import functools

import jax
import jax.numpy as jnp
from jax import lax
from jax.experimental import pallas as pl
from jax.experimental.pallas import tpu as pltpu


_WIDTHS = (512, 384, 256, 128)   # lane-dense widths tried (zero-copy reshape)


def _round_up(x, m):
    return ((x + m - 1) // m) * m


def _round_down(x, m):
    return (x // m) * m


@functools.lru_cache(maxsize=None)
def _chip_config():
    """Return (num_tensorcores, input_tile_budget_bytes, vmem_limit_bytes|None)."""
    try:
        kind = jax.devices()[0].device_kind.lower()
    except Exception:  # no backend yet / CPU fallback
        kind = ""
    # v7x exposes two TensorCores per chip to one Pallas program (v4/v5p
    # megacore behaves similarly under a "parallel" grid axis).
    num_tc = 2 if any(t in kind for t in ("v7", "v4", "v5p")) else 1
    if "v6" in kind:
        # 128 MiB physical VMEM: (2048, 512) f32 tiles; raise the scoped limit
        # so the elementwise temporaries of the big tile have headroom.
        return num_tc, 16 * 1024 * 1024, 64 * 1024 * 1024
    # v5e (16 MiB scoped default), v7x (64 MiB physical) and unknown chips:
    # stay at (1024, 512) f32 tiles inside the default scoped budget.
    # TODO(synk): v7x could take (2048, 512) tiles with a carefully tuned
    # vmem_limit_bytes (~48 MiB); kept conservative here (~6% per-step cost).
    return num_tc, 8 * 1024 * 1024, None


def _bce_sum_kernel(pred_ref, label_ref, out_ref, acc_ref, *,
                    rows, needs_mask, step_axis):
    """Accumulate sum-BCE over one (tile_rows, width) tile."""
    step = pl.program_id(step_axis)
    num_steps = pl.num_programs(step_axis)

    @pl.when(step == 0)
    def _():
        acc_ref[...] = jnp.zeros_like(acc_ref)

    p = pred_ref[...].astype(jnp.float32)
    y = label_ref[...].astype(jnp.float32)
    tile_rows, width = p.shape

    if needs_mask:
        # The last row-block overhangs the array; out-of-bounds rows contain
        # garbage.  Force them to the neutral pair (p=1, y=1) BEFORE the logs
        # so no NaN/Inf can leak into the sum (clamp before multiply keeps the
        # contribution exactly 0).
        if step_axis == 0:
            block_idx = step
        else:
            block_idx = pl.program_id(0) * num_steps + step
        rid = lax.broadcasted_iota(jnp.int32, (tile_rows, width), 0)
        valid = (rid + block_idx * tile_rows) < rows
        p = jnp.where(valid, p, 1.0)
        y = jnp.where(valid, y, 1.0)

    # PyTorch nn.BCELoss clamps each log term at -100 (avoids 0 * -inf = nan).
    # TODO(synk): for hard {0,1} labels a single-log jnp.where(y > 0.5, ...)
    # would halve EUP work, but BCELoss allows soft targets so keep the
    # general two-log form (matches the reference exactly).
    logp = jnp.maximum(jnp.log(p), -100.0)
    log1mp = jnp.maximum(jnp.log(1.0 - p), -100.0)
    term = -(y * logp + (1.0 - y) * log1mp)

    # Vreg-shaped accumulator: per-step VALU adds only; the single cross-lane
    # XLU reduction happens once in the last-step epilogue.
    if tile_rows % 8 == 0:
        acc_ref[...] += term.reshape(tile_rows // 8, 8, width).sum(axis=0)
    else:
        acc_ref[...] += term      # tiny single-block case (rows < 8)

    @pl.when(step == num_steps - 1)
    def _():
        out_ref[...] = jnp.sum(acc_ref[...]).reshape(1, 1, 1)


def _bce_sum(pred, label, *, max_tile_rows=None):
    """Sum of elementwise binary cross entropy over all elements (f32 scalar)."""
    assert pred.shape == label.shape, (pred.shape, label.shape)
    num_tc, tile_budget, vmem_limit = _chip_config()

    n = pred.size
    pred_flat = pred.reshape(-1)
    label_flat = label.reshape(-1)
    width = next((w for w in _WIDTHS if n % w == 0), None)
    if width is None:
        # TODO(synk): flat size not a multiple of 128 — pad only this pair to a
        # lane-dense width (one small extra copy).  Neutral padding (pred=1,
        # label=1) contributes exactly 0 because the -100 clamp precedes the
        # multiply.
        width = 128
        pad = _round_up(n, width) - n
        pred_flat = jnp.concatenate(
            [pred_flat, jnp.ones((pad,), pred_flat.dtype)])
        label_flat = jnp.concatenate(
            [label_flat, jnp.ones((pad,), label_flat.dtype)])
        n += pad
    rows = n // width
    pred2 = pred_flat.reshape(rows, width)      # zero-copy lane-dense view
    label2 = label_flat.reshape(rows, width)

    # Tile rows from the per-chip double-buffered VMEM budget (pred + label).
    item_bytes = pred2.dtype.itemsize + label2.dtype.itemsize
    max_rows = max(8, _round_down(tile_budget // (2 * width * item_bytes), 8))
    if max_tile_rows is not None:                       # test hook
        max_rows = max(8, min(max_rows, _round_down(max_tile_rows, 8)))

    if rows >= 8:
        tile_rows = min(max_rows, _round_down(rows, 8))
    else:
        tile_rows = rows          # full-dim block, allowed by the (8,128) rule
    n_blocks = pl.cdiv(rows, tile_rows)

    # v7x: make the block count even (>=2) so both TensorCores stream half.
    if (num_tc >= 2 and rows >= 16 and tile_rows % 8 == 0
            and not (n_blocks >= 2 and n_blocks % 2 == 0)):
        alt_rows = max(8, _round_up(pl.cdiv(rows, n_blocks + 1), 8))
        alt_blocks = pl.cdiv(rows, alt_rows)
        if alt_blocks >= 2 and alt_blocks % 2 == 0:
            tile_rows, n_blocks = alt_rows, alt_blocks

    n_parts = 2 if (num_tc >= 2 and n_blocks >= 2 and n_blocks % 2 == 0) else 1
    steps = n_blocks // n_parts
    needs_mask = (rows % tile_rows) != 0
    acc_rows = 8 if tile_rows % 8 == 0 else tile_rows

    kernel = functools.partial(
        _bce_sum_kernel, rows=rows, needs_mask=needs_mask,
        step_axis=0 if n_parts == 1 else 1)

    if n_parts == 1:
        grid = (steps,)
        in_map = lambda i: (i, 0)
        out_map = lambda i: (0, 0, 0)
        dims = ("arbitrary",)
    else:
        grid = (n_parts, steps)
        in_map = lambda c, i: (c * steps + i, 0)
        out_map = lambda c, i: (c, 0, 0)
        dims = ("parallel", "arbitrary")

    partials = pl.pallas_call(
        kernel,
        out_shape=jax.ShapeDtypeStruct((n_parts, 1, 1), jnp.float32),
        grid_spec=pltpu.PrefetchScalarGridSpec(
            num_scalar_prefetch=0,
            grid=grid,
            in_specs=[
                pl.BlockSpec((tile_rows, width), in_map),
                pl.BlockSpec((tile_rows, width), in_map),
            ],
            out_specs=pl.BlockSpec((1, 1, 1), out_map),
            scratch_shapes=[pltpu.VMEM((acc_rows, width), jnp.float32)],
        ),
        compiler_params=pltpu.CompilerParams(
            dimension_semantics=dims,
            vmem_limit_bytes=vmem_limit,
        ),
    )(pred2, label2)

    return jnp.sum(partials)    # per-core partials -> scalar


def loss_base(ner_pred, ner_label, re_pred, re_label, *, max_tile_rows=None):
    """Pallas implementation of LossBase.forward.

    loss = BCEsum(ner_pred, ner_label)/seq_len + BCEsum(re_pred, re_label)/seq_len
    with seq_len = ner_pred.shape[1].  Inputs keep their native dtypes (e.g.
    bf16 preds / int8 hard labels); each tile is upcast to f32 inside VMEM.
    """
    seq_len = ner_pred.shape[1]
    ner_sum = _bce_sum(ner_pred, ner_label, max_tile_rows=max_tile_rows)
    re_sum = _bce_sum(re_pred, re_label, max_tile_rows=max_tile_rows)
    return (ner_sum + re_sum) / jnp.float32(seq_len)


def _reference_loss(ner_pred, ner_label, re_pred, re_label):
    seq_len = ner_pred.shape[1]

    def bce_sum(p, y):
        p = p.astype(jnp.float32)
        y = y.astype(jnp.float32)
        logp = jnp.maximum(jnp.log(p), -100.0)
        log1mp = jnp.maximum(jnp.log(1.0 - p), -100.0)
        return jnp.sum(-(y * logp + (1.0 - y) * log1mp))

    return (bce_sum(ner_pred, ner_label)
            + bce_sum(re_pred, re_label)) / seq_len


if __name__ == "__main__":
    key = jax.random.PRNGKey(0)

    # --- test 1: small shapes, single tiny block (rows < 8 accumulator path) ---
    k1, k2, k3, k4 = jax.random.split(key, 4)
    B, S, C, R = 2, 8, 32, 4   # batch=2, seq=8, NER classes=32, relation types=4
    ner_pred = jax.nn.sigmoid(jax.random.normal(k1, (B, S, C), jnp.float32))
    ner_label = jax.random.bernoulli(k2, 0.3, (B, S, C)).astype(jnp.float32)
    re_pred = jax.nn.sigmoid(jax.random.normal(k3, (B, S, S, R), jnp.float32))
    re_label = jax.random.bernoulli(k4, 0.2, (B, S, S, R)).astype(jnp.float32)

    loss = jax.block_until_ready(
        loss_base(ner_pred, ner_label, re_pred, re_label))
    ref = _reference_loss(ner_pred, ner_label, re_pred, re_label)
    assert jnp.allclose(loss, ref, rtol=1e-4, atol=1e-3), (loss, ref)

    # --- test 2: multi-step grid (carried vreg accumulator; on 2-TC chips the
    # even block count also exercises the 2-way parallel split) ---
    k5, k6, k7, k8 = jax.random.split(jax.random.PRNGKey(1), 4)
    B2, S2, C2, R2 = 2, 16, 128, 32
    ner_pred2 = jax.nn.sigmoid(jax.random.normal(k5, (B2, S2, C2), jnp.float32))
    ner_label2 = jax.random.bernoulli(k6, 0.3, (B2, S2, C2)).astype(jnp.float32)
    re_pred2 = jax.nn.sigmoid(
        jax.random.normal(k7, (B2, S2, S2, R2), jnp.float32))
    re_label2 = jax.random.bernoulli(
        k8, 0.2, (B2, S2, S2, R2)).astype(jnp.float32)

    loss2 = jax.block_until_ready(
        loss_base(ner_pred2, ner_label2, re_pred2, re_label2, max_tile_rows=8))
    ref2 = _reference_loss(ner_pred2, ner_label2, re_pred2, re_label2)
    assert jnp.allclose(loss2, ref2, rtol=1e-4, atol=1e-3), (loss2, ref2)

    # --- test 3: ragged shapes (NER hits the small pad fallback, RE hits the
    # in-kernel row-overhang mask) ---
    k9, k10, k11, k12 = jax.random.split(jax.random.PRNGKey(2), 4)
    ner_pred3 = jax.nn.sigmoid(jax.random.normal(k9, (2, 9, 7), jnp.float32))
    ner_label3 = jax.random.bernoulli(k10, 0.3, (2, 9, 7)).astype(jnp.float32)
    re_pred3 = jax.nn.sigmoid(
        jax.random.normal(k11, (2, 9, 16, 16), jnp.float32))
    re_label3 = jax.random.bernoulli(
        k12, 0.2, (2, 9, 16, 16)).astype(jnp.float32)

    loss3 = jax.block_until_ready(
        loss_base(ner_pred3, ner_label3, re_pred3, re_label3, max_tile_rows=8))
    ref3 = _reference_loss(ner_pred3, ner_label3, re_pred3, re_label3)
    assert jnp.allclose(loss3, ref3, rtol=1e-4, atol=1e-3), (loss3, ref3)

    print("KERNEL_OK")
</pallas_src>

<mosaic_0001>
module attributes {stable_mosaic.version = 11 : i64} {
  func.func @_bce_sum_kernel(%arg0: i32, %arg1: memref<1x512xf32, #tpu.memory_space<vmem>>, %arg2: memref<1x512xf32, #tpu.memory_space<vmem>>, %arg3: memref<1x1x1xf32, #tpu.memory_space<vmem>>, %arg4: memref<1x512xf32, #tpu.memory_space<vmem>>) attributes {dimension_semantics = [#tpu.dimension_semantics<arbitrary>], iteration_bounds = array<i64: 1>, scalar_prefetch = 0 : i64, scratch_operands = 1 : i64, tpu.core_type = #tpu.core_type<tc>, window_params = [{transform_indices = @transform_0, window_bounds = array<i64: 1, 512>}, {transform_indices = @transform_1, window_bounds = array<i64: 1, 512>}, {pipeline_mode = #tpu.pipeline_mode<synchronous>, transform_indices = @transform_2, window_bounds = array<i64: 1, 1, 1>}]} {
    %c0_i32 = arith.constant 0 : i32
    %0 = arith.cmpi eq, %arg0, %c0_i32 : i32
    %1 = arith.extui %0 : i1 to i32
    %c0_i32_0 = arith.constant 0 : i32
    %2 = arith.cmpi ne, %1, %c0_i32_0 : i32
    scf.if %2 {
      %cst_14 = arith.constant 0.000000e+00 : f32
      %26 = vector.broadcast %cst_14 : f32 to vector<1x512xf32>
      %c0_15 = arith.constant 0 : index
      %c0_16 = arith.constant 0 : index
      %27 = vector.load %arg4[%c0_15, %c0_16] : memref<1x512xf32, #tpu.memory_space<vmem>>, vector<1x512xf32>
      tpu.vector_store %arg4[%c0_15, %c0_16], %26 {strides = array<i32>} : memref<1x512xf32, #tpu.memory_space<vmem>>, vector<1x512xf32>,
    } else {
    }
    %c0 = arith.constant 0 : index
    %c0_1 = arith.constant 0 : index
    %3 = vector.load %arg1[%c0, %c0_1] : memref<1x512xf32, #tpu.memory_space<vmem>>, vector<1x512xf32>
    %c0_2 = arith.constant 0 : index
    %c0_3 = arith.constant 0 : index
    %4 = vector.load %arg2[%c0_2, %c0_3] : memref<1x512xf32, #tpu.memory_space<vmem>>, vector<1x512xf32>
    %5 = math.log %3 : vector<1x512xf32>
    %cst = arith.constant -1.000000e+02 : f32
    %6 = vector.broadcast %cst : f32 to vector<1x512xf32>
    %7 = arith.maximumf %5, %6 : vector<1x512xf32>
    %cst_4 = arith.constant 1.000000e+00 : f32
    %8 = vector.broadcast %cst_4 : f32 to vector<1x512xf32>
    %9 = arith.subf %8, %3 : vector<1x512xf32>
    %10 = math.log %9 : vector<1x512xf32>
    %cst_5 = arith.constant -1.000000e+02 : f32
    %11 = vector.broadcast %cst_5 : f32 to vector<1x512xf32>
    %12 = arith.maximumf %10, %11 : vector<1x512xf32>
    %13 = arith.mulf %4, %7 : vector<1x512xf32>
    %cst_6 = arith.constant 1.000000e+00 : f32
    %14 = vector.broadcast %cst_6 : f32 to vector<1x512xf32>
    %15 = arith.subf %14, %4 : vector<1x512xf32>
    %16 = arith.mulf %15, %12 : vector<1x512xf32>
    %17 = arith.addf %13, %16 : vector<1x512xf32>
    %cst_7 = arith.constant 0.000000e+00 : f32
    %18 = vector.broadcast %cst_7 : f32 to vector<1x512xf32>
    %19 = arith.subf %18, %17 : vector<1x512xf32>
    %c0_8 = arith.constant 0 : index
    %c0_9 = arith.constant 0 : index
    %20 = vector.load %arg4[%c0_8, %c0_9] : memref<1x512xf32, #tpu.memory_space<vmem>>, vector<1x512xf32>
    %21 = arith.addf %20, %19 : vector<1x512xf32>
    %c0_10 = arith.constant 0 : index
    %c0_11 = arith.constant 0 : index
    %22 = vector.load %arg4[%c0_10, %c0_11] : memref<1x512xf32, #tpu.memory_space<vmem>>, vector<1x512xf32>
    tpu.vector_store %arg4[%c0_10, %c0_11], %21 {strides = array<i32>} : memref<1x512xf32, #tpu.memory_space<vmem>>, vector<1x512xf32>,
    %c0_i32_12 = arith.constant 0 : i32
    %23 = arith.cmpi eq, %arg0, %c0_i32_12 : i32
    %24 = arith.extui %23 : i1 to i32
    %c0_i32_13 = arith.constant 0 : i32
    %25 = arith.cmpi ne, %24, %c0_i32_13 : i32
    scf.if %25 {
      %c0_14 = arith.constant 0 : index
      %c0_15 = arith.constant 0 : index
      %26 = vector.load %arg4[%c0_14, %c0_15] : memref<1x512xf32, #tpu.memory_space<vmem>>, vector<1x512xf32>
      %27 = vector.shape_cast %26 : vector<1x512xf32> to vector<1x1x512xf32>
      %cst_16 = arith.constant dense<0.000000e+00> : vector<1xf32>
      %28 = vector.multi_reduction <add>, %27, %cst_16 [1, 2] : vector<1x1x512xf32> to vector<1xf32>
      %29 = vector.shape_cast %28 : vector<1xf32> to vector<1x1x1xf32>
      %30 = vector.extract %29[0, 0, 0] : f32 from vector<1x1x1xf32>
      %31 = vector.broadcast %30 : f32 to vector<1x1x1xf32>
      %c0_17 = arith.constant 0 : index
      %c0_18 = arith.constant 0 : index
      %c0_19 = arith.constant 0 : index
      %32 = vector.load %arg3[%c0_17, %c0_18, %c0_19] : memref<1x1x1xf32, #tpu.memory_space<vmem>>, vector<1x1x1xf32>
      tpu.vector_store %arg3[%c0_17, %c0_18, %c0_19], %31 {strides = array<i32>} : memref<1x1x1xf32, #tpu.memory_space<vmem>>, vector<1x1x1xf32>,
    } else {
    }
    return
  }
  func.func @transform_0(%arg0: i32) -> (i32, i32) {
    %c0_i32 = arith.constant 0 : i32
    %c0_i32_0 = arith.constant 0 : i32
    return %arg0, %c0_i32 : i32, i32
  }
  func.func @transform_1(%arg0: i32) -> (i32, i32) {
    %c0_i32 = arith.constant 0 : i32
    %c0_i32_0 = arith.constant 0 : i32
    return %arg0, %c0_i32 : i32, i32
  }
  func.func @transform_2(%arg0: i32) -> (i32, i32, i32) {
    %c0_i32 = arith.constant 0 : i32
    %c0_i32_0 = arith.constant 0 : i32
    %c0_i32_1 = arith.constant 0 : i32
    %c0_i32_2 = arith.constant 0 : i32
    return %c0_i32, %c0_i32_0, %c0_i32_1 : i32, i32, i32
  }
}

</mosaic_0001>

<bundles_post_ra>
// kernel: tpu_custom_call.1
= control target key start
LH: loop header
LB: loop body
LE: loop exit
PB: predicated region body
PF: predicated region fallthrough
CT: control target
= control target key end

     0   :  { %7 = vsyncpa [#allocation4], 0  ;;  %s272_s0 = inlined_call_operand.hbm [shape: f32[1,512], index: 0, kind: input, shape index: {}]   ;;  %s273_s1 = inlined_call_operand.hbm [shape: f32[1,512], index: 1, kind: input, shape index: {}]   ;;  %s274_s2 = inlined_call_operand.hbm [shape: f32[1,1,1], index: 2, kind: output, shape index: {}]  }
   0x1   :  { %8 = vsyncpa [#allocation7], 0 }
   0x2   :  { %9 = vsyncpa [#allocation5], 0  ;;  %s209_s9 = smov [#allocation3]   ;;  %s210_s11 = smov [#allocation6]  }
   0x3   :  { %s16_s10 = sshll.u32 %s209_s9, 4  ;;  %s26_s12 = sshll.u32 %s210_s11, 4  ;;  %s17_s10 = int_to_ptr.vmem [resolvable:$true] %s16_s10  ;;  %s27_s12 = int_to_ptr.vmem [resolvable:$true] %s26_s12 }
   0x4   :  { %s137_s15 = scalar_lea.hbm %s272_s0, 64 }
   0x5   :  { %p138_p0 = scmp.ne.s32.totalorder %s272_s0, %s137_s15  ;;  %p141_p1 = scmp.lt.u32.totalorder %s137_s15, %s272_s0 }
   0x7   :  { %p143_p2 = pnand %p141_p1, %p138_p0 }
   0x9   :  { %146 = shalt.err (!%p143_p2)
}
   0xa   :  { %s147_s20 = scalar_lea.vmem %s17_s10, 64  ;;  %p152_p4 = scmp.lt.s32.totalorder %s17_s10, %s17_s10 }
   0xb   :  { %p148_p3 = scmp.ne.s32.totalorder %s17_s10, %s147_s20  ;;  %p153_p5 = scmp.lt.s32.totalorder %s147_s20, %s147_s20 }
   0xd   :  { %p154_p6 = por %p153_p5, %p152_p4 }
   0xf   :  { %p155_p7 = pnand %p154_p6, %p148_p3 }
  0x11   :  { %158 = shalt.err (!%p155_p7)
}
  0x12   :  { %19 = dma.hbm_to_vmem [thread:$0]  %s272_s0, 64, %s17_s10, [#allocation4]  }
  0x13   :  { %s159_s25 = scalar_lea.hbm %s273_s1, 64 }
  0x14   :  { %p160_p8 = scmp.ne.s32.totalorder %s273_s1, %s159_s25  ;;  %p163_p9 = scmp.lt.u32.totalorder %s159_s25, %s273_s1 }
  0x16   :  { %p165_p10 = pnand %p163_p9, %p160_p8 }
  0x18   :  { %168 = shalt.err (!%p165_p10)
}
  0x19   :  { %s169_s30 = scalar_lea.vmem %s27_s12, 64  ;;  %p174_p12 = scmp.lt.s32.totalorder %s27_s12, %s27_s12 }
  0x1a   :  { %p170_p11 = scmp.ne.s32.totalorder %s27_s12, %s169_s30  ;;  %p175_p13 = scmp.lt.s32.totalorder %s169_s30, %s169_s30 }
  0x1c   :  { %p176_p0 = por %p175_p13, %p174_p12 }
  0x1e   :  { %p177_p1 = pnand %p176_p0, %p170_p11 }
  0x20   :  { %180 = shalt.err (!%p177_p1)
}
  0x21   :  { %29 = dma.hbm_to_vmem [thread:$0]  %s273_s1, 64, %s27_s12, [#allocation7]  }
  0x22   :  { %203 = dma.done.wait [#allocation4], 64  }
  0x23   :  { %204 = vsyncadd [#allocation4], 4294967232 }
  0x24   :  { %205 = dma.done.wait [#allocation7], 64  }
  0x25   :  { %206 = vsyncadd [#allocation7], 4294967232  ;;  %v40_v0 = vlaneseq  ;;  %v211_v2 = vmov 0.0   ;;  %v45_v3 = vld [vmem:[#allocation3] sm:$0xf]  ;;  %vm91_vm1 = vcmask 1040384  }
  0x26   :  { %133 = vlog2.f32 %v45_v3  ;;  %v50_v4 = vsub.f32 1.0, %v45_v3  ;;  %v46_v6 = vld [vmem:[#allocation6] sm:$0xf]  ;;  %s212_s1 = smov [#allocation8]   ;;  %vm109_vm2 = vcmask 0  }
  0x27   :  { %vm252_vm0 = vcmp.lt.s32.totalorder %v40_v0, 512  ;;  %v55_v11 = vsub.f32 1.0, %v46_v6  ;;  %v72_v19 = vshrl.u32 %v40_v0, 7  ;;  %s117_s4 = sshll.u32 %s212_s1, 4  ;;  %s118_s4 = int_to_ptr.vmem [resolvable:$true] %s117_s4 }
  0x28   :  { %44 = vst.msk [vmem:[#allocation2] sm:$0xf] %vm252_vm0, %v211_v2  ;;  %135 = vlog2.f32 %v50_v4  ;;  %s181_s6 = scalar_lea.vmem %s118_s4, 16  ;;  %s185_s7 = scalar_lea.vmem %s118_s4, 32 }
  0x29   :  { %v73_v20 = vsub.s32 0, %v72_v19  ;;  %v77_v21 = vsub.s32 1, %v72_v19  ;;  %v81_v22 = vsub.s32 2, %v72_v19  ;;  %v85_v23 = vsub.s32 3, %v72_v19  ;;  %p182_p2 = scmp.ne.s32.totalorder %s118_s4, %s181_s6  ;;  %p186_p3 = scmp.lt.s32.totalorder %s118_s4, %s118_s4 }
  0x2a   :  { %p187_p4 = scmp.lt.s32.totalorder %s185_s7, %s181_s6 }
  0x2c   :  { %p188_p5 = por %p187_p4, %p186_p3 }
  0x2e   :  { %p189_p6 = pnand %p188_p5, %p182_p2 }
  0x2f   :  { %v59_v16 = vld [vmem:[#allocation2] sm:$0xf] }
  0x30   :  { %v134_v5 = vpop.eup %133 }
  0x31   :  { %v48_v7 = vmul.f32 0.6931472, %v134_v5 }
  0x32   :  { %v136_v8 = vpop.eup %135 }
  0x33   :  { %v49_v9 = vmax.f32 %v48_v7, -100.0  ;;  %v52_v10 = vmul.f32 0.6931472, %v136_v8 }
  0x35   :  { %v53_v12 = vmax.f32 %v52_v10, -100.0  ;;  %v54_v13 = vmul.f32 %v49_v9, %v46_v6 }
  0x37   :  { %v56_v14 = vmul.f32 %v55_v11, %v53_v12 }
  0x39   :  { %v57_v15 = vadd.f32 %v56_v14, %v54_v13 }
  0x3b   :  { %v58_v17 = vsub.f32 0.0, %v57_v15 }
  0x3d   :  { %v60_v18 = vadd.f32 %v59_v16, %v58_v17 }
  0x3f   :  { %65 = vst.msk [vmem:[#allocation2] sm:$0xf] %vm252_vm0, %v60_v18 }
  0x46   :  { %v69_v24 = vld [vmem:[#allocation2] sm:$0xf] }
  0x47   :  { %v74_v25 = vrot.slane %v69_v24, %v73_v20  ;;  %v78_v26 = vrot.slane %v69_v24, %v77_v21  ;;  %v82_v27 = vrot.slane %v69_v24, %v81_v22  ;;  %v86_v28 = vrot.slane %v69_v24, %v85_v23 }
  0x49   :  { %v92_v29 = vsel %vm91_vm1, %v74_v25, 0.0  ;;  %v93_v30 = vsel %vm91_vm1, %v78_v26, 0.0  ;;  %v95_v31 = vsel %vm91_vm1, %v82_v27, 0.0  ;;  %v97_v33 = vsel %vm91_vm1, %v86_v28, 0.0 }
  0x4a   :  { %v94_v32 = vadd.f32 %v93_v30, %v92_v29 }
  0x4c   :  { %v96_v34 = vadd.f32 %v95_v31, %v94_v32 }
  0x4e   :  { %v98_v35 = vadd.f32 %v97_v33, %v96_v34 }
  0x50   :  { %99 = vadd.xlane.f32.xlu0 %v98_v35 }
  0xdd   :  { %v100_v36 = vpop.xlane.xlu0 %99 }
  0xde   :  { %v101_v37 = vrot.slane %v100_v36, 4 }
  0xe0   :  { %v102_v38 = vadd.f32 %v101_v37, %v100_v36 }
  0xe2   :  { %v103_v39 = vrot.slane %v102_v38, 2 }
  0xe4   :  { %v104_v40 = vadd.f32 %v103_v39, %v102_v38 }
  0xe6   :  { %v105_v41 = vrot.slane %v104_v40, 1 }
  0xe8   :  { %v106_v42 = vadd.f32 %v105_v41, %v104_v40 }
  0xea   :  { %127 = vpush %v106_v42 }
 0x11b   :  { %s128_s5 = spop %127 }
 0x11c   :  { %v108_v43 = vstv %s128_s5 }
 0x11d   :  { %110 = vst.msk [vmem:[#allocation8] sm:$0x1] %vm109_vm2, %v108_v43 }
 0x11e   :  { %192 = shalt.err (!%p189_p6)
}
 0x11f   :  { %s193_s10 = scalar_lea.hbm %s274_s2, 16 }
 0x120   :  { %p194_p7 = scmp.ne.s32.totalorder %s274_s2, %s193_s10  ;;  %p197_p8 = scmp.lt.u32.totalorder %s193_s10, %s274_s2 }
 0x122   :  { %p199_p9 = pnand %p197_p8, %p194_p7 }
 0x124   :  { %202 = shalt.err (!%p199_p9)
}
 0x125   :  { %120 = dma.vmem_to_hbm [thread:$0]  %s118_s4, 16, %s274_s2, [#allocation5]  }
 0x126   :  { %207 = dma.done.wait [#allocation5], 16  }
 0x127   :  { %208 = vsyncadd [#allocation5], 4294967280 }
 0x128   :  { %124 = vsyncpa [#allocation4], 1 }
 0x129   :  { %125 = vsyncpa [#allocation7], 1 }
 0x12a   :  { %126 = vsyncpa [#allocation5], 1 }

</bundles_post_ra>
